<compile_context>
chip_gen: v7x
topology: tpu7x:2x2x1
jax: 0.10.0
libtpu: 0.0.40
codegen_flags: <defaults>
</compile_context>

<pallas_src>
import functools

import jax
import jax.numpy as jnp
from jax.experimental import pallas as pl
from jax.experimental.pallas import tpu as pltpu


def _round_up(v, m):
    return ((v + m - 1) // m) * m


def _concat_linear_kernel(x_ref, w1_ref, bias_ref, o_ref, *, compute_dtype):
    # x_ref    : (TM, dim_in)      -- one sequence tile of one batch element
    # w1_ref   : (dim_in, TN)      -- resident weight column-slab (already transposed)
    # bias_ref : (1, TN)           -- fused per-batch bias = context @ W2^T + b1 (f32)
    # o_ref    : (TM, TN)
    x = x_ref[...]
    if compute_dtype is not None and x.dtype != jnp.dtype(compute_dtype):
        x = x.astype(compute_dtype)          # VPU cast in-kernel, hides under the MXU
    y = jnp.dot(x, w1_ref[...], preferred_element_type=jnp.float32)   # (TM, TN), f32 acc
    o_ref[...] = (y + bias_ref[...]).astype(o_ref.dtype)


def concat_linear_v2(context, x, w1, b1, w2, *,
                     block_m=1024, block_n=None,
                     compute_dtype=None, out_dtype=None):
    """context: (B, 1+dim_c), x: (B, N, dim_in)
       w1: (dim_out, dim_in)  -- nn.Linear weight
       b1: (dim_out,)         -- nn.Linear bias
       w2: (dim_out, 1+dim_c) -- hyper-bias Linear weight (no bias)
       compute_dtype: optional matmul input dtype (e.g. jnp.bfloat16); accumulation is f32.
       out_dtype: optional output dtype (default: x.dtype).
    """
    B, N, dim_in = x.shape
    dim_out = w1.shape[0]
    out_dtype = x.dtype if out_dtype is None else jnp.dtype(out_dtype)

    # --- Fuse hyper-bias and main bias into one per-batch bias (tiny f32 XLA matmul). ---
    fused_bias = (jnp.dot(context.astype(jnp.float32),
                          jnp.transpose(w2).astype(jnp.float32))
                  + b1.astype(jnp.float32)).reshape(B, 1, dim_out)      # (B, 1, dim_out)

    # --- One-time weight relayout to (dim_in, dim_out): plain K-major MXU contraction,
    #     no per-step XLU transpose.  Weight cast happens once here; x is cast in-kernel. ---
    w1_t = jnp.transpose(w1)
    if compute_dtype is not None:
        w1_t = w1_t.astype(compute_dtype)

    # --- Tile selection.  Sublane quantum 16 covers f32 (8) and bf16 (16) blocks. ---
    sub = 16
    if block_n is None:
        c_itemsize = jnp.dtype(compute_dtype or x.dtype).itemsize
        block_n = 512 if c_itemsize < 4 else 256          # MXU-friendly, multiple of 128
    tn = dim_out if dim_out <= block_n else block_n
    cap_m = _round_up(block_m, sub)
    tm = N if N <= cap_m else cap_m

    # --- Per-generation VMEM budget (10% headroom for Mosaic internal scratch). ---
    try:
        vmem_cap = int(pltpu.get_tpu_info().vmem_capacity_bytes)
    except Exception:
        vmem_cap = 64 * 1024 * 1024                       # safe lower bound (v7x per-TC)
    vmem_limit = int(0.9 * vmem_cap)

    def working_set(tm_, tn_):
        return (dim_in * tn_ * w1_t.dtype.itemsize        # W1 slab, single-buffered
                + 2 * tm_ * dim_in * x.dtype.itemsize     # x tile, double-buffered
                + 2 * tm_ * tn_ * out_dtype.itemsize      # out tile, double-buffered
                + 2 * tn_ * 4                             # fused bias, double-buffered
                + (1 << 20))                              # internal scratch margin

    # Shrink the sequence tile until the working set leaves pipelining headroom.
    while tm > 256 and working_set(tm, tn) > int(0.8 * vmem_limit):
        tm = max(256, _round_up(tm // 2, sub))

    grid = (pl.cdiv(dim_out, tn), B, pl.cdiv(N, tm))      # dim_out outermost: weight slab
                                                          # stays resident across (b, n)

    grid_spec = pltpu.PrefetchScalarGridSpec(
        num_scalar_prefetch=0,
        grid=grid,
        in_specs=[
            # x tile: (TM, dim_in), streamed + double-buffered, keyed on (batch, seq tile).
            pl.BlockSpec((pl.Squeezed(), tm, dim_in), lambda o, b, n: (b, n, 0)),
            # W1^T column slab: (dim_in, TN); constant across the inner (b, n) loop ->
            # single-buffered so a large resident weight is not allocated twice in VMEM.
            pl.BlockSpec((dim_in, tn), lambda o, b, n: (0, o),
                         pipeline_mode=pl.Buffered(1)),
            # fused per-batch bias slab: (1, TN); tiny, default double-buffering hides
            # the refetch at batch boundaries.
            pl.BlockSpec((pl.Squeezed(), 1, tn), lambda o, b, n: (b, 0, o)),
        ],
        out_specs=pl.BlockSpec((pl.Squeezed(), tm, tn), lambda o, b, n: (b, n, o)),
    )

    cost = pl.CostEstimate(
        flops=2 * B * N * dim_in * dim_out,
        transcendentals=0,
        bytes_accessed=int(x.size * x.dtype.itemsize
                           + w1_t.size * w1_t.dtype.itemsize
                           + fused_bias.size * 4
                           + B * N * dim_out * out_dtype.itemsize))

    # TODO(synk): if dim_in alone ever exceeds the VMEM budget (dim_in*TN slab too large),
    # add a K grid axis with an f32 VMEM accumulator (P3); not needed for typical dim_in.
    out = pl.pallas_call(
        functools.partial(_concat_linear_kernel, compute_dtype=compute_dtype),
        out_shape=jax.ShapeDtypeStruct((B, N, dim_out), out_dtype),
        grid_spec=grid_spec,
        compiler_params=pltpu.CompilerParams(
            dimension_semantics=("parallel", "parallel", "parallel"),
            vmem_limit_bytes=vmem_limit),
        cost_estimate=cost,
    )(x, w1_t, fused_bias)
    return out


if __name__ == "__main__":
    # Small shapes consistent with the module's forward.
    B, N = 2, 8
    dim_in, dim_out, dim_c = 32, 32, 3
    dim_ctx = 1 + dim_c

    key = jax.random.PRNGKey(0)
    k_ctx, k_x, k_w1, k_b1, k_w2 = jax.random.split(key, 5)

    context = jax.random.normal(k_ctx, (B, dim_ctx), dtype=jnp.float32)
    x = jax.random.normal(k_x, (B, N, dim_in), dtype=jnp.float32)

    # Deterministic parameter init (nn.Linear shapes).
    w1 = jax.random.normal(k_w1, (dim_out, dim_in), dtype=jnp.float32) * 0.1
    b1 = jax.random.normal(k_b1, (dim_out,), dtype=jnp.float32) * 0.1
    w2 = jax.random.normal(k_w2, (dim_out, dim_ctx), dtype=jnp.float32) * 0.1

    # Pure-JAX reference.
    ref = (jnp.einsum("bnd,od->bno", x, w1) + b1[None, None, :]
           + jnp.einsum("bc,oc->bo", context, w2)[:, None, :])

    # f32 path (tight tolerance).
    out = concat_linear_v2(context, x, w1, b1, w2)
    out = jax.block_until_ready(out)
    assert out.shape == (B, N, dim_out)
    assert jnp.allclose(out, ref, atol=1e-5, rtol=1e-5)

    # bf16 matmul inputs (x cast inside the kernel), f32 accumulation (loose tolerance).
    out_bf16 = concat_linear_v2(context, x, w1, b1, w2, compute_dtype=jnp.bfloat16)
    out_bf16 = jax.block_until_ready(out_bf16)
    assert out_bf16.shape == (B, N, dim_out)
    assert jnp.allclose(out_bf16, ref, atol=5e-2, rtol=5e-2)

    print("KERNEL_OK")
</pallas_src>

<mosaic_0001>
module attributes {stable_mosaic.version = 11 : i64} {
  func.func @_concat_linear_kernel(%arg0: i32, %arg1: i32, %arg2: i32, %arg3: memref<1x8x32xf32, #tpu.memory_space<vmem>>, %arg4: memref<32x32xf32, #tpu.memory_space<vmem>>, %arg5: memref<1x1x32xf32, #tpu.memory_space<vmem>>, %arg6: memref<1x8x32xf32, #tpu.memory_space<vmem>>) attributes {dimension_semantics = [#tpu.dimension_semantics<parallel>, #tpu.dimension_semantics<parallel>, #tpu.dimension_semantics<parallel>], iteration_bounds = array<i64: 1, 2, 1>, scalar_prefetch = 0 : i64, scratch_operands = 0 : i64, tpu.core_type = #tpu.core_type<tc>, window_params = [{transform_indices = @transform_0, window_bounds = array<i64: 1, 8, 32>}, {pipeline_mode = #tpu.pipeline_mode<synchronous>, transform_indices = @transform_1, window_bounds = array<i64: 32, 32>}, {transform_indices = @transform_2, window_bounds = array<i64: 1, 1, 32>}, {transform_indices = @transform_3, window_bounds = array<i64: 1, 8, 32>}]} {
    %c0 = arith.constant 0 : index
    %c0_0 = arith.constant 0 : index
    %c0_1 = arith.constant 0 : index
    %0 = vector.load %arg3[%c0, %c0_0, %c0_1] : memref<1x8x32xf32, #tpu.memory_space<vmem>>, vector<1x8x32xf32>
    %1 = vector.shape_cast %0 : vector<1x8x32xf32> to vector<8x32xf32>
    %c0_2 = arith.constant 0 : index
    %c0_3 = arith.constant 0 : index
    %2 = vector.load %arg4[%c0_2, %c0_3] : memref<32x32xf32, #tpu.memory_space<vmem>>, vector<32x32xf32>
    %cst = arith.constant dense<0.000000e+00> : vector<8x32xf32>
    %3 = tpu.matmul %1, %2, %cst {dimension_numbers = #tpu.dot_dimension_numbers<[1], [0], [0], [1], [0, 0, 1, 1], [], []>} : vector<8x32xf32>, vector<32x32xf32>, vector<8x32xf32> -> vector<8x32xf32>
    %c0_4 = arith.constant 0 : index
    %c0_5 = arith.constant 0 : index
    %c0_6 = arith.constant 0 : index
    %4 = vector.load %arg5[%c0_4, %c0_5, %c0_6] : memref<1x1x32xf32, #tpu.memory_space<vmem>>, vector<1x1x32xf32>
    %5 = vector.shape_cast %4 : vector<1x1x32xf32> to vector<1x32xf32>
    %6 = vector.broadcast %5 : vector<1x32xf32> to vector<8x32xf32>
    %7 = arith.addf %3, %6 : vector<8x32xf32>
    %c0_7 = arith.constant 0 : index
    %c0_8 = arith.constant 0 : index
    %c0_9 = arith.constant 0 : index
    %8 = vector.load %arg6[%c0_7, %c0_8, %c0_9] : memref<1x8x32xf32, #tpu.memory_space<vmem>>, vector<1x8x32xf32>
    %9 = vector.shape_cast %8 : vector<1x8x32xf32> to vector<8x32xf32>
    %10 = vector.shape_cast %7 : vector<8x32xf32> to vector<1x8x32xf32>
    tpu.vector_store %arg6[%c0_7, %c0_8, %c0_9], %10 {strides = array<i32>} : memref<1x8x32xf32, #tpu.memory_space<vmem>>, vector<1x8x32xf32>,
    return
  }
  func.func @transform_0(%arg0: i32, %arg1: i32, %arg2: i32) -> (i32, i32, i32) {
    %c0_i32 = arith.constant 0 : i32
    %c0_i32_0 = arith.constant 0 : i32
    return %arg1, %arg2, %c0_i32 : i32, i32, i32
  }
  func.func @transform_1(%arg0: i32, %arg1: i32, %arg2: i32) -> (i32, i32) {
    %c0_i32 = arith.constant 0 : i32
    %c0_i32_0 = arith.constant 0 : i32
    return %c0_i32, %arg0 : i32, i32
  }
  func.func @transform_2(%arg0: i32, %arg1: i32, %arg2: i32) -> (i32, i32, i32) {
    %c0_i32 = arith.constant 0 : i32
    %c0_i32_0 = arith.constant 0 : i32
    return %arg1, %c0_i32, %arg0 : i32, i32, i32
  }
  func.func @transform_3(%arg0: i32, %arg1: i32, %arg2: i32) -> (i32, i32, i32) {
    %c0_i32 = arith.constant 0 : i32
    return %arg1, %arg2, %arg0 : i32, i32, i32
  }
}

</mosaic_0001>

<bundles_post_ra>
// kernel: tpu_custom_call.1
= control target key start
LH: loop header
LB: loop body
LE: loop exit
PB: predicated region body
PF: predicated region fallthrough
CT: control target
= control target key end

     0   :  { %8 = vsyncpa [#allocation3], 0  ;;  %s980_s0 = inlined_call_operand.hbm [shape: f32[2,8,32], index: 0, kind: input, shape index: {}]   ;;  %s981_s1 = inlined_call_operand.hbm [shape: f32[32,32], index: 1, kind: input, shape index: {}]   ;;  %s982_s2 = inlined_call_operand.vmem [shape: f32[2,1,32], index: 2, kind: input, shape index: {}]   ;;  %s983_s3 = inlined_call_operand.hbm [shape: f32[2,8,32], index: 3, kind: output, shape index: {}]  }
   0x1   :  { %10 = vsyncpa [#allocation3 + $0x1], 0 }
   0x2   :  { %11 = vsyncpa [#allocation6], 0 }
   0x3   :  { %12 = vsyncpa [#allocation4], 0 }
   0x4   :  { %14 = vsyncpa [#allocation4 + $0x1], 0  ;;  %s761_s12 = smov 0   ;;  %s763_s13 = smov 0  }
   0x5   :  { %s765_s14 = smov 0   ;;  %s767_s15 = smov 0  }
   0x6   :  { %s769_s16 = smov 0   ;;  %s771_s17 = smov 0  }
   0x7 LB: > { %s470_s18 = sadd.s32 4294967295, %s731_s17   ;;  %s471_s19 = sadd.s32 4294967294, %s731_s17   ;;  %s731_s17 = sphi %s771_s17, %s20_s17   ;;  %s727_s16 = sphi %s769_s16, %s1007_s16   ;;  %s723_s15 = sphi %s767_s15, %s1006_s15   ;;  %s719_s14 = sphi %s765_s14, %s1005_s14   ;;  %s715_s13 = sphi %s763_s13, %s1004_s13   ;;  %s711_s12 = sphi %s761_s12, %s1003_s12  }
   0x8   : > { %p61_p0 = scmp.ne.s32.totalorder %s715_s13, %s711_s12  ;;  %p795_p1 = scmp.eq.s32.totalorder %s470_s18, 0 }
   0x9   : > { %p799_p2 = scmp.eq.s32.totalorder %s470_s18, 1  ;;  %p149_p3 = scmp.eq.s32.totalorder %s471_s19, 1 }
   0xa   : > { %s988_s20 = scalar_select %p795_p1, 1, 0 }
   0xb   : > { %s989_s21 = scalar_select %p799_p2, 1, 0 }
   0xc   : > { %p805_p4 = por %p795_p1, %p61_p0  ;;  %p472_p5 = scmp.ge.s32.totalorder %s731_s17, 1 }
   0xd   : > { %p810_p6 = por %p149_p3, %p61_p0  ;;  %p156_p7 = scmp.lt.s32.totalorder %s731_s17, 3 }
   0xe   : > { %s990_s22 = scalar_select %p805_p4, 1, 0 }
   0xf   : > { %s991_s23 = scalar_select %p810_p6, 1, 0 }
  0x10   : > { %p815_p8 = pnand %p472_p5, %p156_p7  ;;  %s733_s25 = smov [#allocation5]  }
  0x11   : > { %s170_s26 = sshll.u32 %s733_s25, 4  ;;  %s35_s28 = sadd.s32 1, %s727_s16  ;;  %s171_s26 = int_to_ptr.vmem [resolvable:$true] %s170_s26 }
  0x12   : > { %s992_s24 = scalar_select %p815_p8, 1, 0 }
  0x13   : > { %p517_p9 = pneg %p815_p8  ;;  %s587_s4 = scalar_lea.hbm %s981_s1, 512 }
  0x14   : > { %p588_p12 = scmp.ne.s32.totalorder %s981_s1, %s587_s4  ;;  %p594_p5 = scmp.lt.u32.totalorder %s587_s4, %s981_s1 }
  0x15   : > { %p824_p11 = pnand %p517_p9, %p795_p1 }
  0x17   : > { %p589_p13 = pneg %p824_p11 }
  0x19   : > { %p590_p0 = pnand %p589_p13, %p588_p12 }
  0x1b   : > { %p591_p3 = pneg %p590_p0 }
  0x1d   : > { %p596_p7 = pnand %p594_p5, %p591_p3 }
  0x1f   : > { %599 = shalt.err (!%p596_p7)
}
  0x20   : > { %s600_s9 = scalar_lea.vmem %s171_s26, 512  ;;  %p608_p1 = scmp.lt.s32.totalorder %s171_s26, %s171_s26 }
  0x21   : > { %p601_p9 = scmp.ne.s32.totalorder %s171_s26, %s600_s9  ;;  %p609_p4 = scmp.lt.s32.totalorder %s600_s9, %s600_s9 }
  0x23   : > { %p603_p10 = pnand %p601_p9, %p589_p13  ;;  %p610_p8 = por %p609_p4, %p608_p1 }
  0x25   : > { %p604_p6 = pneg %p603_p10 }
  0x27   : > { %p611_p2 = pnand %p610_p8, %p604_p6 }
  0x29   : > { %614 = shalt.err (!%p611_p2)
}
  0x2a   : > { %s734_s10 = smov 128   ;;  %s735_s11 = smov 8  }
  0x2b   : > { %520 = dma.hbm_to_vmem [thread:$0]  (!%p824_p11), %s981_s1, 512, %s171_s26, [#allocation6], %s734_s10, %s734_s10, %s735_s11  }
  0x2c   : > { %p37_p1 = scmp.ge.s32.totalorder %s35_s28, 2  ;;  %s48_s25 = sadd.s32 1, %s719_s14 }
  0x2d   : > { %p55_p2 = scmp.ne.s32.totalorder %s719_s14, %s715_s13  ;;  %p56_p4 = scmp.eq.s32.totalorder %s731_s17, 0 }
  0x2e   : > { %s1009_s28 = smov (%p37_p1, %s35_s28), 0  ;;  %p995_p8 = scmp.ne.s32.totalorder %s989_s21, 0 }
  0x2f   : > { %p851_p6 = por %p56_p4, %p55_p2  ;;  %s43_s27 = ssub.s32 %s727_s16, %s1009_s28 }
  0x30   : > { %p857_p10 = por %p995_p8, %p55_p2  ;;  %p530_p12 = scmp.lt.s32.totalorder %s731_s17, 2 }
  0x31   : > { %p46_p11 = scmp.eq.s32.totalorder %s43_s27, 0  ;;  %s184_s26 = sand.u32 1, %s719_s14  }
  0x32   : > { %s475_s4 = sshll.u32 %s184_s26, 3  ;;  %s476_s6 = sshll.u32 %s727_s16, 7 }
  0x33   : > { %s866_s5 = scalar_select %p46_p11, %s719_s14, %s48_s25  }
  0x34   : > { %s872_s9 = scalar_lea.hbm %s980_s0, %s476_s6  ;;  %s188_s21 = scalar_lea.vmem [#allocation2], %s475_s4 }
  0x35   : > { %s196_s10 = sshll.u32 %s188_s21, 4  ;;  %p878_p13 = pnand %p530_p12, %p851_p6  ;;  %s874_s10 = int_to_ptr.vmem [resolvable:$true] %s196_s10 }
  0x36   : > { %s185_s18 = scalar_lea.sflag [#allocation3], %s184_s26  ;;  %s615_s19 = scalar_lea.hbm %s872_s9, 128 }
  0x37   : > { %p616_p0 = scmp.ne.s32.totalorder %s872_s9, %s615_s19  ;;  %p617_p3 = pneg %p878_p13 }
  0x38   : > { %s620_s4 = scalar_lea.hbm %s980_s0, 256  ;;  %p621_p9 = scmp.lt.u32.totalorder %s872_s9, %s980_s0 }
  0x39   : > { %p618_p5 = pnand %p617_p3, %p616_p0  ;;  %p622_p1 = scmp.lt.u32.totalorder %s620_s4, %s615_s19 }
  0x3a   : > { %p624_p4 = scmp.lt.u32.totalorder %s615_s19, %s872_s9 }
  0x3b   : > { %p619_p7 = pneg %p618_p5  ;;  %p623_p2 = por %p622_p1, %p621_p9 }
  0x3d   : > { %p625_p6 = por %p624_p4, %p623_p2 }
  0x3f   : > { %p626_p8 = pnand %p625_p6, %p619_p7 }
  0x41   : > { %629 = shalt.err (!%p626_p8)
}
  0x42   : > { %s630_s26 = scalar_lea.vmem %s874_s10, 128  ;;  %s736_s7 = smov [#allocation2]  }
  0x43   : > { %p631_p12 = scmp.ne.s32.totalorder %s874_s10, %s630_s26  ;;  %s635_s8 = sshll.u32 %s736_s7, 4  ;;  %s636_s8 = int_to_ptr.vmem [resolvable:$false] %s635_s8 }
  0x44   : > { %s637_s21 = scalar_lea.vmem %s636_s8, 256  ;;  %p638_p5 = scmp.lt.s32.totalorder %s874_s10, %s636_s8 }
  0x45   : > { %p633_p11 = pnand %p631_p12, %p617_p3  ;;  %p639_p9 = scmp.lt.s32.totalorder %s637_s21, %s630_s26 }
  0x47   : > { %p634_p0 = pneg %p633_p11  ;;  %p640_p1 = por %p639_p9, %p638_p5 }
  0x49   : > { %p641_p2 = pnand %p640_p1, %p634_p0 }
  0x4b   : > { %644 = shalt.err (!%p641_p2)
}
  0x4c   : > { %524 = dma.hbm_to_vmem [thread:$0]  (!%p878_p13), %s872_s9, 128, %s874_s10, %s185_s18  }
  0x4d   : > { %p998_p7 = scmp.ne.s32.totalorder %s992_s24, 0 }
  0x4e   : > { %s910_s19 = sand.u32 (!%p998_p7), 1, %s715_s13   ;;  %p999_p3 = scmp.ne.s32.totalorder (!%p998_p7), %s990_s22, 0 }
  0x4f   : > { %214 = sbr.rel (%p998_p7) target bundleno = 329 (0x149), region = 32  ;;  %s478_s25 = sshll.u32 (!%p998_p7), %s910_s19, 3 }
  0x50   : > { %s217_s27 = scalar_lea.sflag (!%p998_p7), [#allocation3], %s910_s19  ;;  %s220_s4 = scalar_lea.vmem (!%p998_p7), [#allocation2], %s478_s25 }
  0x56   : > { %698 = dma.done.wait (%p999_p3), %s217_s27, 128  }
  0x57   : > { %700 = vsyncadd (%p999_p3), %s217_s27, 4294967168  ;;  %p1000_p4 = scmp.ne.s32.totalorder %s988_s20, 0 }
  0x59   : > { %702 = dma.done.wait (%p1000_p4), [#allocation6], 512  }
  0x5a   : > { %704 = vsyncadd (%p1000_p4), [#allocation6], 4294966784  ;;  %v737_v0 = vmov 0.0|0.0   ;;  %vm738_vm0 = vmmov 0   ;;  %v739_v1 = vmov 0.0   ;;  %v260_v2 = vld [vmem:[#allocation5] sm:$0xff] }
  0x5b   : > { %503 = vmatprep.subr.bf16.mxu0 %v737_v0  ;;  %500 = vmatprep.mubr.msk.f32.mxu0 %vm738_vm0, %v739_v1  ;;  %v261_v3 = vld [vmem:[#allocation5 + $0x8] sm:$0xff]  ;;  %v262_v4 = vld [vmem:[#allocation5 + $0x10] sm:$0xff]  ;;  %v263_v6 = vld [vmem:[#allocation5 + $0x18] sm:$0xff]  ;;  %vm271_vm1 = vcmask 261120   ;;  %p253_p13 = scmp.lt.s32.totalorder %s723_s15, 1  ;;  %s484_s10 = sshll.u32 %s723_s15, 7 }
  0x5c   : > { %v504_v5 = vpack.c.bf16 %v261_v3, %v260_v2  ;;  %v507_v7 = vpack.c.bf16 %v263_v6, %v262_v4  ;;  %v259_v8 = vld [vmem:[%s220_s4] sm:$0xff]  ;;  %s252_s11 = scalar_lea.vmem [#allocation7], %s478_s25  ;;  %s931_s26 = scalar_lea.hbm %s983_s3, %s484_s10 }
  0x5d   : > { %s254_s20 = scalar_select %p253_p13, %s723_s15, 1 }
  0x5e   : > { %505 = vmatpush3.bf16.msra.mxu0 %v504_v5  ;;  %s362_s18 = sshll.u32 %s252_s11, 4  ;;  %s347_s7 = scalar_lea.sflag [#allocation4], %s910_s19  ;;  %s933_s18 = int_to_ptr.vmem [resolvable:$true] %s362_s18 }
  0x5f   : > { %506 = vmatprep.subr.bf16.mxu0 %v737_v0  ;;  %s258_s9 = scalar_lea.vmem %s982_s2, %s254_s20  ;;  %s645_s8 = scalar_lea.vmem %s933_s18, 128 }
  0x60   : > { %v481_v9 = vld [vmem:[%s258_s9] ss:$0 sm:$0xff]  ;;  %p646_p6 = scmp.ne.s32.totalorder %s933_s18, %s645_s8  ;;  %s740_s15 = smov [#allocation7]  }
  0x61   : > { %s649_s21 = sshll.u32 %s740_s15, 4  ;;  %s650_s21 = int_to_ptr.vmem [resolvable:$false] %s649_s21 }
  0x62   : > { %508 = vmatpush3.bf16.msra.mxu0 %v507_v7  ;;  %p647_p8 = pnand %p646_p6, %p857_p10  ;;  %s651_s25 = scalar_lea.vmem %s650_s21, 256 }
  0x63   : > { %p652_p11 = scmp.lt.s32.totalorder %s933_s18, %s650_s21  ;;  %p653_p0 = scmp.lt.s32.totalorder %s651_s25, %s645_s8 }
  0x64   : > { %p648_p12 = pneg %p647_p8 }
  0x65   : > { %501 = vmatmul.mubr.msk.f32.vlgmr.msra.gmra.mrb[0].mxu0 %vm271_vm1, %v259_v8  ;;  %p654_p5 = por %p653_p0, %p652_p11 }
  0x67   : > { %p655_p9 = pnand %p654_p5, %p648_p12 }
 0x138   : > { %v341_v10 = vpop.f32.mrb[0].mxu0 }
 0x139   : > { %v342_v11 = vadd.f32 %v481_v9, %v341_v10  ;;  %v502_v12 = vpop.f32.mrb[1].mxu0 }
 0x13b   : > { %345 = vst.msk [vmem:[%s252_s11] sm:$0xff] %vm271_vm1, %v342_v11 }
 0x13c   : > { %658 = shalt.err (!%p655_p9)
}
 0x13d   : > { %s659_s19 = scalar_lea.hbm %s931_s26, 128  ;;  %s663_s20 = scalar_lea.hbm %s983_s3, 256 }
 0x13e   : > { %p660_p1 = scmp.ne.s32.totalorder %s931_s26, %s659_s19  ;;  %p664_p3 = scmp.lt.u32.totalorder %s931_s26, %s983_s3 }
 0x13f   : > { %p665_p4 = scmp.lt.u32.totalorder %s663_s20, %s659_s19  ;;  %p667_p6 = scmp.lt.u32.totalorder %s659_s19, %s931_s26 }
 0x140   : > { %p661_p2 = pnand %p660_p1, %p857_p10 }
 0x141   : > { %p666_p13 = por %p665_p4, %p664_p3 }
 0x142   : > { %p662_p7 = pneg %p661_p2 }
 0x143   : > { %p668_p8 = por %p667_p6, %p666_p13 }
 0x145   : > { %p669_p12 = pnand %p668_p8, %p662_p7 }
 0x147   : > { %672 = shalt.err (!%p669_p12)
}
 0x148   : > { %515 = dma.vmem_to_hbm [thread:$0]  (%p857_p10), %s933_s18, 128, %s931_s26, %s347_s7  }
 0x149 PF: > { %s374_s9 = sand.u32 1, %s711_s12   ;;  %p1001_p11 = scmp.ne.s32.totalorder %s991_s23, 0 }
 0x14a   : > { %p1002_p0 = scmp.ge.s32.totalorder %s731_s17, 2  ;;  %s375_s10 = scalar_lea.sflag [#allocation4], %s374_s9 }
 0x14c   : > { %p526_p5 = pnand %p1002_p0, %p1001_p11 }
 0x14e   : > { %706 = dma.done.wait (!%p526_p5), %s375_s10, 128  }
 0x14f   : > { %708 = vsyncadd (!%p526_p5), %s375_s10, 4294967168  ;;  %s20_s17 = sadd.s32 1, %s731_s17   ;;  %s1003_s12 = smov %s715_s13 }
 0x150   : > { %p17_p9 = scmp.ge.s32.totalorder %s20_s17, 4   ;;  %s1004_s13 = smov %s719_s14 }
 0x151   : > { %s1005_s14 = smov %s866_s5  ;;  %s1006_s15 = smov %s727_s16 }
 0x152   : > { %s1007_s16 = smov %s1009_s28  ;;  %19 = sbr.rel (!%p17_p9) target bundleno = 7 (0x7), region = 85 }
 0x159   :  { %380 = vsyncpa [#allocation3], 1 }
 0x15a   :  { %382 = vsyncpa [#allocation3 + $0x1], 1 }
 0x15b   :  { %383 = vsyncpa [#allocation6], 1 }
 0x15c   :  { %384 = vsyncpa [#allocation4], 1 }
 0x15d   :  { %386 = vsyncpa [#allocation4 + $0x1], 1 }

</bundles_post_ra>
